<compile_context>
chip_gen: v6e
topology: v6e:2x2x1
jax: 0.10.0
libtpu: 0.0.40
codegen_flags: <defaults>
</compile_context>

<pallas_src>
import numpy as np
import jax
import jax.numpy as jnp
from jax.experimental import pallas as pl
from jax.experimental.pallas import tpu as pltpu

# ----- static config (mirrors SetCriterion.__init__) -----
NUM_CLASSES = 255            # soft-token classification dim -> V = 256
V = NUM_CLASSES + 1
EOS_COEF = 0.1
TEMPERATURE = 0.07
B, Q, T, D = 2, 16, 16, 32   # batch, queries, text tokens, contrastive dim
N_PAD = 128                  # lane-dense padded count of matched (src, tgt) box pairs


def _total(x):
    """Full sum of a 2-D/3-D array kept as a (1, 1) value (no scalar extraction)."""
    if x.ndim == 3:
        x = jnp.sum(x, axis=0)
    return jnp.sum(jnp.sum(x, axis=1, keepdims=True), axis=0, keepdims=True)


# -------------------- fused loss kernel --------------------
def _fused_criterion_kernel(logits_ref, tgt_sim_ref, eos_w_ref, tgt_len_ref,
                            src_box_ref, tgt_box_ref, pair_mask_ref,
                            q_ref, t_ref, pos_ref, nb_ref,
                            ce_ref, card_ref, bbox_ref, giou_ref, contr_ref):
    inv_nb = 1.0 / nb_ref[...]                                    # (1,1) exact, once

    # ---------- loss_labels: soft-token cross entropy ----------
    logits = logits_ref[...].astype(jnp.float32)                  # [B*Q, V]
    m = jnp.max(logits, axis=-1, keepdims=True)
    z = logits - m
    lse = jnp.log(jnp.sum(jnp.exp(z), axis=-1, keepdims=True))
    logp = z - lse                                                # log_softmax(-1)
    loss_ce = -jnp.sum(logp * tgt_sim_ref[...], axis=-1, keepdims=True)   # [B*Q,1]
    loss_ce = loss_ce * eos_w_ref[...]
    ce_ref[...] = _total(loss_ce) * inv_nb

    # ---------- loss_cardinality (logging metric) ----------
    # argmax(-1) != V-1  <=>  max over the first V-1 classes >= last (no-object) logit
    # ('>=' matches torch argmax tie-breaking: lowest index wins on ties).
    # Static lane slices instead of iota + where passes.
    max_fg = jnp.max(logits[:, :V - 1], axis=-1, keepdims=True)   # [B*Q, 1]
    last = logits[:, V - 1:V]                                     # [B*Q, 1]
    not_empty = (max_fg >= last).astype(jnp.float32)              # [B*Q, 1]
    tgt_len = tgt_len_ref[...]                                    # [B, 1]
    card_err = jnp.zeros((1, 1), jnp.float32)
    for b in range(B):  # static unroll over the tiny batch: per-batch L1 error
        cp = jnp.sum(not_empty[b * Q:(b + 1) * Q, :], axis=0, keepdims=True)
        card_err = card_err + jnp.abs(cp - tgt_len[b:b + 1, :])
    card_ref[...] = card_err * (1.0 / B)                          # l1 mean over batch

    # ---------- loss_boxes: L1 + GIoU, boxes on the lane axis ----------
    src = src_box_ref[...]            # [4, N]  rows = (cx, cy, w, h)
    tgt = tgt_box_ref[...]            # [4, N]
    msk = pair_mask_ref[...]          # [1, N]  1.0 for real matched pairs
    bbox_ref[...] = _total(jnp.abs(src - tgt) * msk) * inv_nb

    def xyxy(bx):
        cx, cy, w, h = bx[0:1, :], bx[1:2, :], bx[2:3, :], bx[3:4, :]
        return cx - 0.5 * w, cy - 0.5 * h, cx + 0.5 * w, cy + 0.5 * h

    sx0, sy0, sx1, sy1 = xyxy(src)
    tx0, ty0, tx1, ty1 = xyxy(tgt)
    area_s = (sx1 - sx0) * (sy1 - sy0)
    area_t = (tx1 - tx0) * (ty1 - ty0)
    inter = (jnp.maximum(jnp.minimum(sx1, tx1) - jnp.maximum(sx0, tx0), 0.0)
             * jnp.maximum(jnp.minimum(sy1, ty1) - jnp.maximum(sy0, ty0), 0.0))
    union = area_s + area_t - inter
    # eps-guarded EUP reciprocals: degenerate / padded boxes can't emit NaN/Inf that
    # would survive the mask multiply; approx recip runs in the (otherwise idle) EUP slot.
    iou = inter * pl.reciprocal(union + 1e-6, approx=True)
    enc = ((jnp.maximum(sx1, tx1) - jnp.minimum(sx0, tx0))
           * (jnp.maximum(sy1, ty1) - jnp.minimum(sy0, ty0)))
    giou = iou - (enc - union) * pl.reciprocal(enc + 1e-6, approx=True)
    giou_ref[...] = _total((1.0 - giou) * msk) * inv_nb

    # ---------- loss_contrastive_align ----------
    # Fold 1/temperature into the query operand, feed the MXU bf16 x bf16 with f32 acc.
    qb = (q_ref[...] * (1.0 / TEMPERATURE)).astype(jnp.bfloat16)  # [B,Q,D]
    tb = t_ref[...].astype(jnp.bfloat16)                          # [B,T,D]
    pos = pos_ref[...]                                            # [B,Q,T] in {0,1}
    logits_qt = jnp.einsum('bqd,btd->bqt', qb, tb,
                           preferred_element_type=jnp.float32)    # [B,Q,T]
    pos_logits = -logits_qt * pos            # == -(logits.masked_fill(~pos, 0))

    def lsexp(x, axis):
        mm = jnp.max(x, axis=axis, keepdims=True)
        return mm + jnp.log(jnp.sum(jnp.exp(x - mm), axis=axis, keepdims=True))

    # box -> token (reduce over token axis 2)
    has_pos_bt = jnp.max(pos, axis=2, keepdims=True)
    pos_term = jnp.sum(pos_logits, axis=2, keepdims=True)
    neg_term = lsexp(logits_qt, 2)
    nb_pos = jnp.sum(pos, axis=2, keepdims=True) + 1e-6
    box_to_token = jnp.where(has_pos_bt > 0,
                             pos_term * pl.reciprocal(nb_pos, approx=True) + neg_term,
                             0.0)
    # token -> box (reduce over query axis 1)
    has_pos_tb = jnp.max(pos, axis=1, keepdims=True)
    pos_term2 = jnp.sum(pos_logits, axis=1, keepdims=True)
    neg_term2 = lsexp(logits_qt, 1)
    nb_pos2 = jnp.sum(pos, axis=1, keepdims=True) + 1e-6
    token_to_box = jnp.where(has_pos_tb > 0,
                             pos_term2 * pl.reciprocal(nb_pos2, approx=True) + neg_term2,
                             0.0)
    contr_ref[...] = 0.5 * (_total(box_to_token) + _total(token_to_box)) * inv_nb


# -------------------- single pallas_call wrapper --------------------
_SCALAR = jax.ShapeDtypeStruct((1, 1), jnp.float32)


def _vmem():
    return pl.BlockSpec(memory_space=pltpu.MemorySpace.VMEM)


def _fused_losses(logits2d, target_sim2d, eos_w2d, tgt_len,
                  src_box_T, tgt_box_T, pair_mask,
                  proj_queries, proj_tokens, pos_map, num_boxes):
    # Everything (<100 KiB) fits in VMEM: no grid, one launch, five (1,1) results.
    # TODO(synk): when scaled to aux decoder layers / big B, add a leading "parallel"
    # grid axis so v7x's second TensorCore is used.
    return pl.pallas_call(
        _fused_criterion_kernel,
        out_shape=(_SCALAR,) * 5,
        in_specs=[_vmem()] * 11,
        out_specs=(_vmem(),) * 5,
    )(logits2d, target_sim2d, eos_w2d, tgt_len,
      src_box_T, tgt_box_T, pair_mask,
      proj_queries, proj_tokens, pos_map, num_boxes)


# -------------------- end-to-end device path (all inside one jit) --------------------
@jax.jit
def set_criterion_device(pred_logits, pred_boxes, proj_queries, proj_tokens, pos_map,
                         target_sim, eos_w, tgt_len, flat_src_idx, tgt_box_T,
                         pair_mask, num_boxes):
    # On-device gather of matched predicted boxes (no host roundtrip), transposed so
    # coordinates sit on sublanes and matched pairs on the lane axis.
    src_box_T = jnp.take(pred_boxes.reshape(B * Q, 4), flat_src_idx, axis=0).T  # [4,N_PAD]

    ce, card, bbox, giou, contr = _fused_losses(
        pred_logits.reshape(B * Q, V), target_sim, eos_w, tgt_len,
        src_box_T, tgt_box_T, pair_mask,
        proj_queries, proj_tokens, pos_map, num_boxes)
    return {
        'loss_ce': ce[0, 0],
        'cardinality_error': card[0, 0],
        'loss_bbox': bbox[0, 0],
        'loss_giou': giou[0, 0],
        'loss_contrastive_align': contr[0, 0],
    }


# -------------------- host-side glue (matcher / tokenizer outputs -> padded arrays) ----
def prepare_match_arrays(targets, positive_map, indices):
    """Depends only on targets + matcher indices (host data), never on model outputs,
    so it forces no device->host sync of predictions."""
    target_sim = np.zeros((B * Q, V), np.float32)
    target_sim[:, -1] = 1.0
    eos_w = np.full((B * Q, 1), EOS_COEF, np.float32)
    flat_src, tgt_rows = [], []
    offset = 0
    for b, (src, tgt) in enumerate(indices):
        src = np.asarray(src, np.int64)
        tgt = np.asarray(tgt, np.int64)
        target_sim[b * Q + src] = positive_map[tgt + offset]
        eos_w[b * Q + src, 0] = 1.0
        flat_src.append((b * Q + src).astype(np.int32))
        tgt_rows.append(np.asarray(targets[b]['boxes'], np.float32)[tgt])
        offset += len(targets[b]['boxes'])
    tgt_len = np.array([[len(t['labels'])] for t in targets], np.float32)     # [B,1]

    flat_src = np.concatenate(flat_src)
    tgt_rows = np.concatenate(tgt_rows, axis=0)
    n = flat_src.shape[0]
    assert n <= N_PAD
    flat_src_p = np.zeros((N_PAD,), np.int32)            # pad -> query 0 (masked out)
    flat_src_p[:n] = flat_src
    tgt_box_T = np.full((4, N_PAD), 0.5, np.float32)     # benign pad boxes
    tgt_box_T[:, :n] = tgt_rows.T
    pair_mask = np.zeros((1, N_PAD), np.float32)
    pair_mask[0, :n] = 1.0

    num_boxes = float(max(sum(len(t['labels']) for t in targets), 1))
    # TODO(synk): distributed all_reduce of num_boxes has no single-chip Pallas equivalent.
    num_boxes = np.full((1, 1), num_boxes, np.float32)

    return (jnp.asarray(target_sim), jnp.asarray(eos_w), jnp.asarray(tgt_len),
            jnp.asarray(flat_src_p), jnp.asarray(tgt_box_T), jnp.asarray(pair_mask),
            jnp.asarray(num_boxes))


if __name__ == "__main__":
    key = jax.random.PRNGKey(0)
    k1, k2, k3, k4, k5 = jax.random.split(key, 5)

    pred_logits = jax.random.normal(k1, (B, Q, V), jnp.float32)
    pred_boxes = jax.nn.sigmoid(jax.random.normal(k2, (B, Q, 4), jnp.float32))
    proj_queries = jax.random.normal(k3, (B, Q, D), jnp.float32)
    proj_queries = proj_queries / jnp.linalg.norm(proj_queries, axis=-1, keepdims=True)
    proj_tokens = jax.random.normal(k4, (B, T, D), jnp.float32)
    proj_tokens = proj_tokens / jnp.linalg.norm(proj_tokens, axis=-1, keepdims=True)

    # TODO(synk): Hungarian matcher + Roberta tokenizer char_to_token are injected,
    # host-side dependencies; their outputs are precomputed inputs here.
    indices = [(np.array([0, 5, 9]), np.array([2, 0, 1])),
               (np.array([2, 7]), np.array([1, 0]))]
    n_per_batch = [3, 2]
    tb_keys = jax.random.split(k5, B)
    targets = [{'boxes': np.asarray(jax.nn.sigmoid(
                    jax.random.normal(tb_keys[b], (n_per_batch[b], 4), jnp.float32))),
                'labels': np.arange(n_per_batch[b])} for b in range(B)]

    # soft-token positive map over the label dim (one row per target box)
    total_tgts = sum(n_per_batch)
    positive_map = np.zeros((total_tgts, V), np.float32)
    for i in range(total_tgts):
        positive_map[i, 2 * i] = 0.5
        positive_map[i, 2 * i + 1] = 0.5

    # contrastive-align positive map [B, Q, T] (token spans per matched query)
    cmap = np.zeros((B, Q, T), np.float32)
    cmap[0, 0, 2:5] = 1.0
    cmap[0, 5, 0:2] = 1.0
    cmap[0, 9, 6:9] = 1.0
    cmap[1, 2, 1:4] = 1.0
    cmap[1, 7, 5:7] = 1.0

    (target_sim, eos_w, tgt_len, flat_src_idx,
     tgt_box_T, pair_mask, num_boxes) = prepare_match_arrays(targets, positive_map,
                                                             indices)

    losses = set_criterion_device(pred_logits, pred_boxes, proj_queries, proj_tokens,
                                  jnp.asarray(cmap),
                                  target_sim, eos_w, tgt_len, flat_src_idx,
                                  tgt_box_T, pair_mask, num_boxes)
    losses = jax.block_until_ready(losses)
    assert all(bool(jnp.isfinite(v)) for v in losses.values())
    # TODO(synk): loss_masks (NestedTensor + bilinear interpolate + focal/dice) and
    # loss_isfinal are not translated (not present in the example outputs).
    print("KERNEL_OK")
</pallas_src>

<mosaic_0001>
module attributes {stable_mosaic.version = 11 : i64} {
  func.func @_fused_criterion_kernel(%arg0: memref<32x256xf32, #tpu.memory_space<vmem>>, %arg1: memref<32x256xf32, #tpu.memory_space<vmem>>, %arg2: memref<32x1xf32, #tpu.memory_space<vmem>>, %arg3: memref<2x1xf32, #tpu.memory_space<vmem>>, %arg4: memref<4x128xf32, #tpu.memory_space<vmem>>, %arg5: memref<4x128xf32, #tpu.memory_space<vmem>>, %arg6: memref<1x128xf32, #tpu.memory_space<vmem>>, %arg7: memref<2x16x32xf32, #tpu.memory_space<vmem>>, %arg8: memref<2x16x32xf32, #tpu.memory_space<vmem>>, %arg9: memref<2x16x16xf32, #tpu.memory_space<vmem>>, %arg10: memref<1x1xf32, #tpu.memory_space<vmem>>, %arg11: memref<1x1xf32, #tpu.memory_space<vmem>>, %arg12: memref<1x1xf32, #tpu.memory_space<vmem>>, %arg13: memref<1x1xf32, #tpu.memory_space<vmem>>, %arg14: memref<1x1xf32, #tpu.memory_space<vmem>>, %arg15: memref<1x1xf32, #tpu.memory_space<vmem>>) attributes {dimension_semantics = [], scalar_prefetch = 0 : i64, scratch_operands = 0 : i64, tpu.core_type = #tpu.core_type<tc>} {
    %c0 = arith.constant 0 : index
    %c0_0 = arith.constant 0 : index
    %0 = vector.load %arg10[%c0, %c0_0] : memref<1x1xf32, #tpu.memory_space<vmem>>, vector<1x1xf32>
    %cst = arith.constant 1.000000e+00 : f32
    %1 = vector.broadcast %cst : f32 to vector<1x1xf32>
    %2 = arith.divf %1, %0 : vector<1x1xf32>
    %c0_1 = arith.constant 0 : index
    %c0_2 = arith.constant 0 : index
    %3 = vector.load %arg0[%c0_1, %c0_2] : memref<32x256xf32, #tpu.memory_space<vmem>>, vector<32x256xf32>
    %cst_3 = arith.constant dense<0xFF800000> : vector<32xf32>
    %4 = vector.multi_reduction <maximumf>, %3, %cst_3 [1] : vector<32x256xf32> to vector<32xf32>
    %5 = vector.shape_cast %4 : vector<32xf32> to vector<32x1xf32>
    %6 = vector.broadcast %5 : vector<32x1xf32> to vector<32x256xf32>
    %7 = arith.subf %3, %6 : vector<32x256xf32>
    %8 = math.exp %7 : vector<32x256xf32>
    %cst_4 = arith.constant dense<0.000000e+00> : vector<32xf32>
    %9 = vector.multi_reduction <add>, %8, %cst_4 [1] : vector<32x256xf32> to vector<32xf32>
    %10 = vector.shape_cast %9 : vector<32xf32> to vector<32x1xf32>
    %11 = math.log %10 : vector<32x1xf32>
    %12 = vector.broadcast %11 : vector<32x1xf32> to vector<32x256xf32>
    %13 = arith.subf %7, %12 : vector<32x256xf32>
    %c0_5 = arith.constant 0 : index
    %c0_6 = arith.constant 0 : index
    %14 = vector.load %arg1[%c0_5, %c0_6] : memref<32x256xf32, #tpu.memory_space<vmem>>, vector<32x256xf32>
    %15 = arith.mulf %13, %14 : vector<32x256xf32>
    %cst_7 = arith.constant dense<0.000000e+00> : vector<32xf32>
    %16 = vector.multi_reduction <add>, %15, %cst_7 [1] : vector<32x256xf32> to vector<32xf32>
    %17 = vector.shape_cast %16 : vector<32xf32> to vector<32x1xf32>
    %cst_8 = arith.constant 0.000000e+00 : f32
    %18 = vector.broadcast %cst_8 : f32 to vector<32x1xf32>
    %19 = arith.subf %18, %17 : vector<32x1xf32>
    %c0_9 = arith.constant 0 : index
    %c0_10 = arith.constant 0 : index
    %20 = vector.load %arg2[%c0_9, %c0_10] : memref<32x1xf32, #tpu.memory_space<vmem>>, vector<32x1xf32>
    %21 = arith.mulf %19, %20 : vector<32x1xf32>
    %cst_11 = arith.constant dense<0.000000e+00> : vector<32xf32>
    %22 = vector.multi_reduction <add>, %21, %cst_11 [1] : vector<32x1xf32> to vector<32xf32>
    %23 = vector.shape_cast %22 : vector<32xf32> to vector<32x1xf32>
    %cst_12 = arith.constant dense<0.000000e+00> : vector<1xf32>
    %24 = vector.multi_reduction <add>, %23, %cst_12 [0] : vector<32x1xf32> to vector<1xf32>
    %25 = vector.shape_cast %24 : vector<1xf32> to vector<1x1xf32>
    %26 = arith.mulf %25, %2 : vector<1x1xf32>
    %c0_13 = arith.constant 0 : index
    %c0_14 = arith.constant 0 : index
    %27 = vector.load %arg11[%c0_13, %c0_14] : memref<1x1xf32, #tpu.memory_space<vmem>>, vector<1x1xf32>
    tpu.vector_store %arg11[%c0_13, %c0_14], %26 {strides = array<i32>} : memref<1x1xf32, #tpu.memory_space<vmem>>, vector<1x1xf32>,
    %28 = vector.extract_strided_slice %3 {offsets = [0, 0], sizes = [32, 255], strides = [1, 1]} : vector<32x256xf32> to vector<32x255xf32>
    %cst_15 = arith.constant dense<0xFF800000> : vector<32xf32>
    %29 = vector.multi_reduction <maximumf>, %28, %cst_15 [1] : vector<32x255xf32> to vector<32xf32>
    %30 = vector.shape_cast %29 : vector<32xf32> to vector<32x1xf32>
    %31 = vector.extract_strided_slice %3 {offsets = [0, 255], sizes = [32, 1], strides = [1, 1]} : vector<32x256xf32> to vector<32x1xf32>
    %32 = arith.cmpf oge, %30, %31 : vector<32x1xf32>
    %33 = arith.extui %32 : vector<32x1xi1> to vector<32x1xi32>
    %34 = arith.sitofp %33 : vector<32x1xi32> to vector<32x1xf32>
    %c0_16 = arith.constant 0 : index
    %c0_17 = arith.constant 0 : index
    %35 = vector.load %arg3[%c0_16, %c0_17] : memref<2x1xf32, #tpu.memory_space<vmem>>, vector<2x1xf32>
    %cst_18 = arith.constant 0.000000e+00 : f32
    %36 = vector.broadcast %cst_18 : f32 to vector<1x1xf32>
    %37 = vector.extract_strided_slice %34 {offsets = [0, 0], sizes = [16, 1], strides = [1, 1]} : vector<32x1xf32> to vector<16x1xf32>
    %cst_19 = arith.constant dense<0.000000e+00> : vector<1xf32>
    %38 = vector.multi_reduction <add>, %37, %cst_19 [0] : vector<16x1xf32> to vector<1xf32>
    %39 = vector.shape_cast %38 : vector<1xf32> to vector<1x1xf32>
    %40 = vector.extract_strided_slice %35 {offsets = [0, 0], sizes = [1, 1], strides = [1, 1]} : vector<2x1xf32> to vector<1x1xf32>
    %41 = arith.subf %39, %40 : vector<1x1xf32>
    %42 = math.absf %41 : vector<1x1xf32>
    %43 = arith.addf %36, %42 : vector<1x1xf32>
    %44 = vector.extract_strided_slice %34 {offsets = [16, 0], sizes = [16, 1], strides = [1, 1]} : vector<32x1xf32> to vector<16x1xf32>
    %cst_20 = arith.constant dense<0.000000e+00> : vector<1xf32>
    %45 = vector.multi_reduction <add>, %44, %cst_20 [0] : vector<16x1xf32> to vector<1xf32>
    %46 = vector.shape_cast %45 : vector<1xf32> to vector<1x1xf32>
    %47 = vector.extract_strided_slice %35 {offsets = [1, 0], sizes = [1, 1], strides = [1, 1]} : vector<2x1xf32> to vector<1x1xf32>
    %48 = arith.subf %46, %47 : vector<1x1xf32>
    %49 = math.absf %48 : vector<1x1xf32>
    %50 = arith.addf %43, %49 : vector<1x1xf32>
    %cst_21 = arith.constant 5.000000e-01 : f32
    %51 = vector.broadcast %cst_21 : f32 to vector<1x1xf32>
    %52 = arith.mulf %50, %51 : vector<1x1xf32>
    %c0_22 = arith.constant 0 : index
    %c0_23 = arith.constant 0 : index
    %53 = vector.load %arg12[%c0_22, %c0_23] : memref<1x1xf32, #tpu.memory_space<vmem>>, vector<1x1xf32>
    tpu.vector_store %arg12[%c0_22, %c0_23], %52 {strides = array<i32>} : memref<1x1xf32, #tpu.memory_space<vmem>>, vector<1x1xf32>,
    %c0_24 = arith.constant 0 : index
    %c0_25 = arith.constant 0 : index
    %54 = vector.load %arg4[%c0_24, %c0_25] : memref<4x128xf32, #tpu.memory_space<vmem>>, vector<4x128xf32>
    %c0_26 = arith.constant 0 : index
    %c0_27 = arith.constant 0 : index
    %55 = vector.load %arg5[%c0_26, %c0_27] : memref<4x128xf32, #tpu.memory_space<vmem>>, vector<4x128xf32>
    %c0_28 = arith.constant 0 : index
    %c0_29 = arith.constant 0 : index
    %56 = vector.load %arg6[%c0_28, %c0_29] : memref<1x128xf32, #tpu.memory_space<vmem>>, vector<1x128xf32>
    %57 = arith.subf %54, %55 : vector<4x128xf32>
    %58 = math.absf %57 : vector<4x128xf32>
    %59 = vector.broadcast %56 : vector<1x128xf32> to vector<4x128xf32>
    %60 = arith.mulf %58, %59 : vector<4x128xf32>
    %cst_30 = arith.constant dense<0.000000e+00> : vector<4xf32>
    %61 = vector.multi_reduction <add>, %60, %cst_30 [1] : vector<4x128xf32> to vector<4xf32>
    %62 = vector.shape_cast %61 : vector<4xf32> to vector<4x1xf32>
    %cst_31 = arith.constant dense<0.000000e+00> : vector<1xf32>
    %63 = vector.multi_reduction <add>, %62, %cst_31 [0] : vector<4x1xf32> to vector<1xf32>
    %64 = vector.shape_cast %63 : vector<1xf32> to vector<1x1xf32>
    %65 = arith.mulf %64, %2 : vector<1x1xf32>
    %c0_32 = arith.constant 0 : index
    %c0_33 = arith.constant 0 : index
    %66 = vector.load %arg13[%c0_32, %c0_33] : memref<1x1xf32, #tpu.memory_space<vmem>>, vector<1x1xf32>
    tpu.vector_store %arg13[%c0_32, %c0_33], %65 {strides = array<i32>} : memref<1x1xf32, #tpu.memory_space<vmem>>, vector<1x1xf32>,
    %67 = vector.extract_strided_slice %54 {offsets = [0, 0], sizes = [1, 128], strides = [1, 1]} : vector<4x128xf32> to vector<1x128xf32>
    %68 = vector.extract_strided_slice %54 {offsets = [1, 0], sizes = [1, 128], strides = [1, 1]} : vector<4x128xf32> to vector<1x128xf32>
    %69 = vector.extract_strided_slice %54 {offsets = [2, 0], sizes = [1, 128], strides = [1, 1]} : vector<4x128xf32> to vector<1x128xf32>
    %70 = vector.extract_strided_slice %54 {offsets = [3, 0], sizes = [1, 128], strides = [1, 1]} : vector<4x128xf32> to vector<1x128xf32>
    %cst_34 = arith.constant 5.000000e-01 : f32
    %71 = vector.broadcast %cst_34 : f32 to vector<1x128xf32>
    %72 = arith.mulf %71, %69 : vector<1x128xf32>
    %73 = arith.subf %67, %72 : vector<1x128xf32>
    %cst_35 = arith.constant 5.000000e-01 : f32
    %74 = vector.broadcast %cst_35 : f32 to vector<1x128xf32>
    %75 = arith.mulf %74, %70 : vector<1x128xf32>
    %76 = arith.subf %68, %75 : vector<1x128xf32>
    %cst_36 = arith.constant 5.000000e-01 : f32
    %77 = vector.broadcast %cst_36 : f32 to vector<1x128xf32>
    %78 = arith.mulf %77, %69 : vector<1x128xf32>
    %79 = arith.addf %67, %78 : vector<1x128xf32>
    %cst_37 = arith.constant 5.000000e-01 : f32
    %80 = vector.broadcast %cst_37 : f32 to vector<1x128xf32>
    %81 = arith.mulf %80, %70 : vector<1x128xf32>
    %82 = arith.addf %68, %81 : vector<1x128xf32>
    %83 = vector.extract_strided_slice %55 {offsets = [0, 0], sizes = [1, 128], strides = [1, 1]} : vector<4x128xf32> to vector<1x128xf32>
    %84 = vector.extract_strided_slice %55 {offsets = [1, 0], sizes = [1, 128], strides = [1, 1]} : vector<4x128xf32> to vector<1x128xf32>
    %85 = vector.extract_strided_slice %55 {offsets = [2, 0], sizes = [1, 128], strides = [1, 1]} : vector<4x128xf32> to vector<1x128xf32>
    %86 = vector.extract_strided_slice %55 {offsets = [3, 0], sizes = [1, 128], strides = [1, 1]} : vector<4x128xf32> to vector<1x128xf32>
    %cst_38 = arith.constant 5.000000e-01 : f32
    %87 = vector.broadcast %cst_38 : f32 to vector<1x128xf32>
    %88 = arith.mulf %87, %85 : vector<1x128xf32>
    %89 = arith.subf %83, %88 : vector<1x128xf32>
    %cst_39 = arith.constant 5.000000e-01 : f32
    %90 = vector.broadcast %cst_39 : f32 to vector<1x128xf32>
    %91 = arith.mulf %90, %86 : vector<1x128xf32>
    %92 = arith.subf %84, %91 : vector<1x128xf32>
    %cst_40 = arith.constant 5.000000e-01 : f32
    %93 = vector.broadcast %cst_40 : f32 to vector<1x128xf32>
    %94 = arith.mulf %93, %85 : vector<1x128xf32>
    %95 = arith.addf %83, %94 : vector<1x128xf32>
    %cst_41 = arith.constant 5.000000e-01 : f32
    %96 = vector.broadcast %cst_41 : f32 to vector<1x128xf32>
    %97 = arith.mulf %96, %86 : vector<1x128xf32>
    %98 = arith.addf %84, %97 : vector<1x128xf32>
    %99 = arith.subf %79, %73 : vector<1x128xf32>
    %100 = arith.subf %82, %76 : vector<1x128xf32>
    %101 = arith.mulf %99, %100 : vector<1x128xf32>
    %102 = arith.subf %95, %89 : vector<1x128xf32>
    %103 = arith.subf %98, %92 : vector<1x128xf32>
    %104 = arith.mulf %102, %103 : vector<1x128xf32>
    %105 = arith.minimumf %79, %95 : vector<1x128xf32>
    %106 = arith.maximumf %73, %89 : vector<1x128xf32>
    %107 = arith.subf %105, %106 : vector<1x128xf32>
    %cst_42 = arith.constant 0.000000e+00 : f32
    %108 = vector.broadcast %cst_42 : f32 to vector<1x128xf32>
    %109 = arith.maximumf %107, %108 : vector<1x128xf32>
    %110 = arith.minimumf %82, %98 : vector<1x128xf32>
    %111 = arith.maximumf %76, %92 : vector<1x128xf32>
    %112 = arith.subf %110, %111 : vector<1x128xf32>
    %cst_43 = arith.constant 0.000000e+00 : f32
    %113 = vector.broadcast %cst_43 : f32 to vector<1x128xf32>
    %114 = arith.maximumf %112, %113 : vector<1x128xf32>
    %115 = arith.mulf %109, %114 : vector<1x128xf32>
    %116 = arith.addf %101, %104 : vector<1x128xf32>
    %117 = arith.subf %116, %115 : vector<1x128xf32>
    %cst_44 = arith.constant 9.99999997E-7 : f32
    %118 = vector.broadcast %cst_44 : f32 to vector<1x128xf32>
    %119 = arith.addf %117, %118 : vector<1x128xf32>
    %120 = tpu.reciprocal %119 {approx = true} : vector<1x128xf32> -> vector<1x128xf32>
    %121 = arith.mulf %115, %120 : vector<1x128xf32>
    %122 = arith.maximumf %79, %95 : vector<1x128xf32>
    %123 = arith.minimumf %73, %89 : vector<1x128xf32>
    %124 = arith.subf %122, %123 : vector<1x128xf32>
    %125 = arith.maximumf %82, %98 : vector<1x128xf32>
    %126 = arith.minimumf %76, %92 : vector<1x128xf32>
    %127 = arith.subf %125, %126 : vector<1x128xf32>
    %128 = arith.mulf %124, %127 : vector<1x128xf32>
    %129 = arith.subf %128, %117 : vector<1x128xf32>
    %cst_45 = arith.constant 9.99999997E-7 : f32
    %130 = vector.broadcast %cst_45 : f32 to vector<1x128xf32>
    %131 = arith.addf %128, %130 : vector<1x128xf32>
    %132 = tpu.reciprocal %131 {approx = true} : vector<1x128xf32> -> vector<1x128xf32>
    %133 = arith.mulf %129, %132 : vector<1x128xf32>
    %134 = arith.subf %121, %133 : vector<1x128xf32>
    %cst_46 = arith.constant 1.000000e+00 : f32
    %135 = vector.broadcast %cst_46 : f32 to vector<1x128xf32>
    %136 = arith.subf %135, %134 : vector<1x128xf32>
    %137 = arith.mulf %136, %56 : vector<1x128xf32>
    %cst_47 = arith.constant dense<0.000000e+00> : vector<1xf32>
    %138 = vector.multi_reduction <add>, %137, %cst_47 [1] : vector<1x128xf32> to vector<1xf32>
    %139 = vector.shape_cast %138 : vector<1xf32> to vector<1x1xf32>
    %cst_48 = arith.constant dense<0.000000e+00> : vector<1xf32>
    %140 = vector.multi_reduction <add>, %139, %cst_48 [0] : vector<1x1xf32> to vector<1xf32>
    %141 = vector.shape_cast %140 : vector<1xf32> to vector<1x1xf32>
    %142 = arith.mulf %141, %2 : vector<1x1xf32>
    %c0_49 = arith.constant 0 : index
    %c0_50 = arith.constant 0 : index
    %143 = vector.load %arg14[%c0_49, %c0_50] : memref<1x1xf32, #tpu.memory_space<vmem>>, vector<1x1xf32>
    tpu.vector_store %arg14[%c0_49, %c0_50], %142 {strides = array<i32>} : memref<1x1xf32, #tpu.memory_space<vmem>>, vector<1x1xf32>,
    %c0_51 = arith.constant 0 : index
    %c0_52 = arith.constant 0 : index
    %c0_53 = arith.constant 0 : index
    %144 = vector.load %arg7[%c0_51, %c0_52, %c0_53] : memref<2x16x32xf32, #tpu.memory_space<vmem>>, vector<2x16x32xf32>
    %cst_54 = arith.constant 14.2857141 : f32
    %145 = vector.broadcast %cst_54 : f32 to vector<2x16x32xf32>
    %146 = arith.mulf %144, %145 : vector<2x16x32xf32>
    %147 = arith.truncf %146 : vector<2x16x32xf32> to vector<2x16x32xbf16>
    %c0_55 = arith.constant 0 : index
    %c0_56 = arith.constant 0 : index
    %c0_57 = arith.constant 0 : index
    %148 = vector.load %arg8[%c0_55, %c0_56, %c0_57] : memref<2x16x32xf32, #tpu.memory_space<vmem>>, vector<2x16x32xf32>
    %149 = arith.truncf %148 : vector<2x16x32xf32> to vector<2x16x32xbf16>
    %c0_58 = arith.constant 0 : index
    %c0_59 = arith.constant 0 : index
    %c0_60 = arith.constant 0 : index
    %150 = vector.load %arg9[%c0_58, %c0_59, %c0_60] : memref<2x16x16xf32, #tpu.memory_space<vmem>>, vector<2x16x16xf32>
    "tpu.trace_start"() <{level = 10 : i32, message = "bqd,btd->bqt"}> : () -> ()
    %cst_61 = arith.constant dense<0.000000e+00> : vector<2x16x16xf32>
    %151 = tpu.matmul %147, %149, %cst_61 {dimension_numbers = #tpu.dot_dimension_numbers<[2], [2], [1], [1], [0, 0, 0, 1, 1, 1], [0], [0]>} : vector<2x16x32xbf16>, vector<2x16x32xbf16>, vector<2x16x16xf32> -> vector<2x16x16xf32>
    "tpu.trace_stop"() : () -> ()
    %cst_62 = arith.constant 0.000000e+00 : f32
    %152 = vector.broadcast %cst_62 : f32 to vector<2x16x16xf32>
    %153 = arith.subf %152, %151 : vector<2x16x16xf32>
    %154 = arith.mulf %153, %150 : vector<2x16x16xf32>
    %cst_63 = arith.constant dense<0xFF800000> : vector<2x16xf32>
    %155 = vector.multi_reduction <maximumf>, %150, %cst_63 [2] : vector<2x16x16xf32> to vector<2x16xf32>
    %156 = vector.shape_cast %155 : vector<2x16xf32> to vector<2x16x1xf32>
    %cst_64 = arith.constant dense<0.000000e+00> : vector<2x16xf32>
    %157 = vector.multi_reduction <add>, %154, %cst_64 [2] : vector<2x16x16xf32> to vector<2x16xf32>
    %158 = vector.shape_cast %157 : vector<2x16xf32> to vector<2x16x1xf32>
    %cst_65 = arith.constant dense<0xFF800000> : vector<2x16xf32>
    %159 = vector.multi_reduction <maximumf>, %151, %cst_65 [2] : vector<2x16x16xf32> to vector<2x16xf32>
    %160 = vector.shape_cast %159 : vector<2x16xf32> to vector<2x16x1xf32>
    %161 = vector.broadcast %160 : vector<2x16x1xf32> to vector<2x16x16xf32>
    %162 = arith.subf %151, %161 : vector<2x16x16xf32>
    %163 = math.exp %162 : vector<2x16x16xf32>
    %cst_66 = arith.constant dense<0.000000e+00> : vector<2x16xf32>
    %164 = vector.multi_reduction <add>, %163, %cst_66 [2] : vector<2x16x16xf32> to vector<2x16xf32>
    %165 = vector.shape_cast %164 : vector<2x16xf32> to vector<2x16x1xf32>
    %166 = math.log %165 : vector<2x16x1xf32>
    %167 = arith.addf %160, %166 : vector<2x16x1xf32>
    %cst_67 = arith.constant dense<0.000000e+00> : vector<2x16xf32>
    %168 = vector.multi_reduction <add>, %150, %cst_67 [2] : vector<2x16x16xf32> to vector<2x16xf32>
    %169 = vector.shape_cast %168 : vector<2x16xf32> to vector<2x16x1xf32>
    %cst_68 = arith.constant 9.99999997E-7 : f32
    %170 = vector.broadcast %cst_68 : f32 to vector<2x16x1xf32>
    %171 = arith.addf %169, %170 : vector<2x16x1xf32>
    %cst_69 = arith.constant 0.000000e+00 : f32
    %172 = vector.broadcast %cst_69 : f32 to vector<2x16x1xf32>
    %173 = arith.cmpf ogt, %156, %172 : vector<2x16x1xf32>
    %174 = tpu.reciprocal %171 {approx = true} : vector<2x16x1xf32> -> vector<2x16x1xf32>
    %175 = arith.mulf %158, %174 : vector<2x16x1xf32>
    %176 = arith.addf %175, %167 : vector<2x16x1xf32>
    %cst_70 = arith.constant 0.000000e+00 : f32
    %177 = vector.broadcast %cst_70 : f32 to vector<2x16x1xf32>
    %178 = arith.select %173, %176, %177 : vector<2x16x1xi1>, vector<2x16x1xf32>
    %cst_71 = arith.constant dense<0xFF800000> : vector<2x16xf32>
    %179 = vector.multi_reduction <maximumf>, %150, %cst_71 [1] : vector<2x16x16xf32> to vector<2x16xf32>
    %180 = vector.shape_cast %179 : vector<2x16xf32> to vector<2x1x16xf32>
    %cst_72 = arith.constant dense<0.000000e+00> : vector<2x16xf32>
    %181 = vector.multi_reduction <add>, %154, %cst_72 [1] : vector<2x16x16xf32> to vector<2x16xf32>
    %182 = vector.shape_cast %181 : vector<2x16xf32> to vector<2x1x16xf32>
    %cst_73 = arith.constant dense<0xFF800000> : vector<2x16xf32>
    %183 = vector.multi_reduction <maximumf>, %151, %cst_73 [1] : vector<2x16x16xf32> to vector<2x16xf32>
    %184 = vector.shape_cast %183 : vector<2x16xf32> to vector<2x1x16xf32>
    %185 = vector.broadcast %184 : vector<2x1x16xf32> to vector<2x16x16xf32>
    %186 = arith.subf %151, %185 : vector<2x16x16xf32>
    %187 = math.exp %186 : vector<2x16x16xf32>
    %cst_74 = arith.constant dense<0.000000e+00> : vector<2x16xf32>
    %188 = vector.multi_reduction <add>, %187, %cst_74 [1] : vector<2x16x16xf32> to vector<2x16xf32>
    %189 = vector.shape_cast %188 : vector<2x16xf32> to vector<2x1x16xf32>
    %190 = math.log %189 : vector<2x1x16xf32>
    %191 = arith.addf %184, %190 : vector<2x1x16xf32>
    %cst_75 = arith.constant dense<0.000000e+00> : vector<2x16xf32>
    %192 = vector.multi_reduction <add>, %150, %cst_75 [1] : vector<2x16x16xf32> to vector<2x16xf32>
    %193 = vector.shape_cast %192 : vector<2x16xf32> to vector<2x1x16xf32>
    %cst_76 = arith.constant 9.99999997E-7 : f32
    %194 = vector.broadcast %cst_76 : f32 to vector<2x1x16xf32>
    %195 = arith.addf %193, %194 : vector<2x1x16xf32>
    %cst_77 = arith.constant 0.000000e+00 : f32
    %196 = vector.broadcast %cst_77 : f32 to vector<2x1x16xf32>
    %197 = arith.cmpf ogt, %180, %196 : vector<2x1x16xf32>
    %198 = tpu.reciprocal %195 {approx = true} : vector<2x1x16xf32> -> vector<2x1x16xf32>
    %199 = arith.mulf %182, %198 : vector<2x1x16xf32>
    %200 = arith.addf %199, %191 : vector<2x1x16xf32>
    %cst_78 = arith.constant 0.000000e+00 : f32
    %201 = vector.broadcast %cst_78 : f32 to vector<2x1x16xf32>
    %202 = arith.select %197, %200, %201 : vector<2x1x16xi1>, vector<2x1x16xf32>
    %cst_79 = arith.constant dense<0.000000e+00> : vector<16x1xf32>
    %203 = vector.multi_reduction <add>, %178, %cst_79 [0] : vector<2x16x1xf32> to vector<16x1xf32>
    %cst_80 = arith.constant dense<0.000000e+00> : vector<16xf32>
    %204 = vector.multi_reduction <add>, %203, %cst_80 [1] : vector<16x1xf32> to vector<16xf32>
    %205 = vector.shape_cast %204 : vector<16xf32> to vector<16x1xf32>
    %cst_81 = arith.constant dense<0.000000e+00> : vector<1xf32>
    %206 = vector.multi_reduction <add>, %205, %cst_81 [0] : vector<16x1xf32> to vector<1xf32>
    %207 = vector.shape_cast %206 : vector<1xf32> to vector<1x1xf32>
    %cst_82 = arith.constant dense<0.000000e+00> : vector<1x16xf32>
    %208 = vector.multi_reduction <add>, %202, %cst_82 [0] : vector<2x1x16xf32> to vector<1x16xf32>
    %cst_83 = arith.constant dense<0.000000e+00> : vector<1xf32>
    %209 = vector.multi_reduction <add>, %208, %cst_83 [1] : vector<1x16xf32> to vector<1xf32>
    %210 = vector.shape_cast %209 : vector<1xf32> to vector<1x1xf32>
    %cst_84 = arith.constant dense<0.000000e+00> : vector<1xf32>
    %211 = vector.multi_reduction <add>, %210, %cst_84 [0] : vector<1x1xf32> to vector<1xf32>
    %212 = vector.shape_cast %211 : vector<1xf32> to vector<1x1xf32>
    %213 = arith.addf %207, %212 : vector<1x1xf32>
    %cst_85 = arith.constant 5.000000e-01 : f32
    %214 = vector.broadcast %cst_85 : f32 to vector<1x1xf32>
    %215 = arith.mulf %214, %213 : vector<1x1xf32>
    %216 = arith.mulf %215, %2 : vector<1x1xf32>
    %c0_86 = arith.constant 0 : index
    %c0_87 = arith.constant 0 : index
    %217 = vector.load %arg15[%c0_86, %c0_87] : memref<1x1xf32, #tpu.memory_space<vmem>>, vector<1x1xf32>
    tpu.vector_store %arg15[%c0_86, %c0_87], %216 {strides = array<i32>} : memref<1x1xf32, #tpu.memory_space<vmem>>, vector<1x1xf32>,
    return
  }
}

</mosaic_0001>

<bundles_post_ra>
// kernel: set_criterion_device.1
= control target key start
LH: loop header
LB: loop body
LE: loop exit
PB: predicated region body
PF: predicated region fallthrough
CT: control target
= control target key end

     0   :  { %s1457_s0 = inlined_call_operand.vmem [shape: f32[32,256], index: 0, kind: input, shape index: {}]   ;;  %s1458_s1 = inlined_call_operand.vmem [shape: f32[32,256], index: 1, kind: input, shape index: {}]   ;;  %s1459_s2 = inlined_call_operand.vmem [shape: f32[32,1], index: 2, kind: input, shape index: {}]   ;;  %s1460_s3 = inlined_call_operand.vmem [shape: f32[2,1], index: 3, kind: input, shape index: {}]   ;;  %s1461_s4 = inlined_call_operand.vmem [shape: f32[4,128], index: 4, kind: input, shape index: {}]   ;;  %s1462_s5 = inlined_call_operand.vmem [shape: f32[4,128], index: 5, kind: input, shape index: {}]   ;;  %s1463_s6 = inlined_call_operand.vmem [shape: f32[1,128], index: 6, kind: input, shape index: {}]   ;;  %s1464_s7 = inlined_call_operand.vmem [shape: f32[2,16,32], index: 7, kind: input, shape index: {}]   ;;  %s1465_s8 = inlined_call_operand.vmem [shape: f32[2,16,32], index: 8, kind: input, shape index: {}]   ;;  %s1466_s9 = inlined_call_operand.vmem [shape: f32[2,16,16], index: 9, kind: input, shape index: {}]   ;;  %s1467_s10 = inlined_call_operand.<no memory space> [shape: f32[1,1], index: 10, kind: input, shape index: {}]   ;;  %s1468_s11 = inlined_call_operand.hbm [shape: f32[1,1], index: 11, kind: output, shape index: {0}]   ;;  %s1469_s12 = inlined_call_operand.hbm [shape: f32[1,1], index: 12, kind: output, shape index: {1}]   ;;  %s1470_s13 = inlined_call_operand.hbm [shape: f32[1,1], index: 13, kind: output, shape index: {2}]   ;;  %s1471_s14 = inlined_call_operand.hbm [shape: f32[1,1], index: 14, kind: output, shape index: {3}]   ;;  %s1472_s15 = inlined_call_operand.hbm [shape: f32[1,1], index: 15, kind: output, shape index: {4}]  }
   0x1   :  { %v21_v0 = vstv %s1467_s10 }
   0x2   :  { %22 = vst [vmem:[#allocation2] sm:$0x1] %v21_v0 }
   0x3   :  { %23 = vsyncpa [#allocation4], 0 }
   0x4   :  { %24 = vsyncpa [#allocation6], 0  ;;  %v345_v1 = vld [vmem:[%s1465_s8] sm:$0xff]  ;;  %v346_v2 = vld [vmem:[%s1465_s8 + $0x8] sm:$0xff]  ;;  %vm355_vm0 = vcmask 261120   ;;  %v968_v4 = vmov 0.0  }
   0x5   :  { %v347_v3 = vld [vmem:[%s1465_s8 + $0x10] sm:$0xff]  ;;  %771 = vmatprep.subr.bf16.mxu0 %v968_v4  ;;  %777 = vmatprep.subr.bf16.mxu1 %v968_v4  ;;  %v349_v5 = vpack.c.bf16 %v346_v2, %v345_v1  ;;  %v348_v6 = vld [vmem:[%s1465_s8 + $0x18] sm:$0xff]  ;;  %v335_v7 = vld [vmem:[%s1464_s7] sm:$0xff]  ;;  %vm969_vm1 = vmmov 0  }
   0x6   :  { %v336_v8 = vld [vmem:[%s1464_s7 + $0x8] sm:$0xff]  ;;  %v350_v9 = vpack.c.bf16 %v348_v6, %v347_v3  ;;  %773 = vmatprep.mubr.msk.bf16.mxu0 %vm969_vm1, %v968_v4  ;;  %779 = vmatprep.mubr.msk.bf16.mxu1 %vm969_vm1, %v968_v4  ;;  %v339_v10 = vmul.f32 14.285714, %v335_v7  ;;  %v337_v11 = vld [vmem:[%s1464_s7 + $0x10] sm:$0xff]  ;;  %v338_v12 = vld [vmem:[%s1464_s7 + $0x18] sm:$0xff] }
   0x7   :  { %v360_v13 = vsel %vm355_vm0, %v349_v5, 0  ;;  %v340_v14 = vmul.f32 14.285714, %v336_v8  ;;  %v341_v15 = vmul.f32 14.285714, %v337_v11  ;;  %v1092_v16 = vld [vmem:[%s1457_s0] sm:$0xff] }
   0x8   :  { %772 = vmatpush3.bf16.xpose.msra.mxu0 %v360_v13  ;;  %v407_v17 = vsel %vm355_vm0, %v350_v9, 0  ;;  %v342_v18 = vmul.f32 14.285714, %v338_v12  ;;  %v1098_v19 = vld [vmem:[%s1457_s0 + $0x8] sm:$0xff]  ;;  %v1103_v20 = vld [vmem:[%s1457_s0 + $0x20] sm:$0xff]  ;;  %v1117_v24 = vld [vmem:[%s1457_s0 + $0x10] sm:$0xff] }
   0x9   :  { %v1108_v21 = vld [vmem:[%s1457_s0 + $0x28] sm:$0xff]  ;;  %778 = vmatpush3.bf16.xpose.msra.mxu1 %v407_v17  ;;  %v60_v22 = vmax.f32 %v1092_v16, %v1098_v19  ;;  %v1122_v25 = vld [vmem:[%s1457_s0 + $0x18] sm:$0xff]  ;;  %v1127_v26 = vld [vmem:[%s1457_s0 + $0x30] sm:$0xff] }
   0xa   :  { %v66_v23 = vmax.f32 %v1103_v20, %v1108_v21  ;;  %v1132_v27 = vld [vmem:[%s1457_s0 + $0x38] sm:$0xff] }
   0xb   :  { %25 = vsyncpa [#allocation9], 0  ;;  %v343_v28 = vpack.c.bf16 %v340_v14, %v339_v10  ;;  %61 = vmax.xlane.f32.xlu0 %v60_v22  ;;  %v63_v29 = vmax.f32 %v1117_v24, %v1122_v25  ;;  %v344_v30 = vpack.c.bf16 %v342_v18, %v341_v15  ;;  %v69_v31 = vmax.f32 %v1127_v26, %v1132_v27  ;;  %v1191_v17 = vld [vmem:[%s1466_s9] sm:$0xff]  ;;  %s972_s27 = smov [#allocation5]  }
   0xc   :  { %67 = vmax.xlane.f32.xlu1 %v66_v23  ;;  %vm458_vm2 = vcmask 130048   ;;  %vm185_vm3 = vcmask 1039360   ;;  %vm215_vm7 = vcmask 1048568   ;;  %vm266_vm11 = vcmask 1043456   ;;  %s709_s28 = sshll.u32 %s972_s27, 4  ;;  %s710_s28 = int_to_ptr.vmem [resolvable:$true] %s709_s28 }
   0xd   :  { %v186_v23 = vsel %vm185_vm3, %v1098_v19, -inf  ;;  %vm328_vm12 = vcmask 1040384   ;;  %vm168_vm13 = vcmask 7168   ;;  %s862_s30 = scalar_lea.vmem %s710_s28, 16  ;;  %s866_s16 = scalar_lea.vmem %s710_s28, 32 }
   0xe   :  { %p863_p0 = scmp.ne.s32.totalorder %s710_s28, %s862_s30  ;;  %p867_p1 = scmp.lt.s32.totalorder %s710_s28, %s710_s28 }
   0xf   :  { %774 = vmatmul.mubr.msk.bf16.vlgmr.msra.gmra.mxu0 %vm355_vm0, %v343_v28  ;;  %64 = vmax.xlane.f32.xlu0 %v63_v29  ;;  %v1198_v28 = vld [vmem:[%s1466_s9 + $0x8] sm:$0xff]  ;;  %p868_p2 = scmp.lt.s32.totalorder %s866_s16, %s862_s30 }
  0x10   :  { %780 = vmatmul.mubr.msk.bf16.vlgmr.msra.gmra.mxu1 %vm355_vm0, %v344_v30  ;;  %70 = vmax.xlane.f32.xlu1 %v69_v31  ;;  %v1202_v31 = vsel %vm458_vm2, %v1191_v17, 0.0 }
  0x11   :  { %p869_p3 = por %p868_p2, %p867_p1 }
  0x13   :  { %p870_p4 = pnand %p869_p3, %p863_p0 }
  0x94   :  { %v62_v32 = vpop.xlane.xlu0 %61 }
  0x95   :  { %v68_v33 = vpop.xlane.xlu1 %67  ;;  %v1141_v34 = vsub.f32 %v1092_v16, %v62_v32  ;;  %v1144_v35 = vsub.f32 %v1098_v19, %v62_v32 }
  0x96   :  { %v1147_v37 = vsub.f32 %v1103_v20, %v68_v33  ;;  %v1150_v38 = vsub.f32 %v1108_v21, %v68_v33  ;;  %v187_v33 = vmax.f32 %v1092_v16, %v186_v23  ;;  %v354_v16 = vld [vmem:[%s1466_s9 + $0x18] sm:$0xff]  ;;  %v214_v23 = vld [vmem:[%s1460_s3] sm:$0x3]  ;;  %s970_s3 = smov 127  }
  0x97   :  { %v80_v39 = vmul.f32 1.442695, %v1141_v34  ;;  %v82_v41 = vmul.f32 1.442695, %v1144_v35 }
  0x98   :  { %v65_v36 = vpop.xlane.xlu0 %64  ;;  %v88_v44 = vmul.f32 1.442695, %v1147_v37  ;;  %v90_v45 = vmul.f32 1.442695, %v1150_v38 }
  0x99   :  { %v1154_v40 = vsub.f32 %v1117_v24, %v65_v36  ;;  %v1158_v42 = vsub.f32 %v1122_v25, %v65_v36  ;;  %v71_v43 = vpop.xlane.xlu1 %70  ;;  %792 = vpow2.f32 %v80_v39  ;;  %v1208_v39 = vld [vmem:[%s1466_s9 + $0x10] sm:$0xff] }
  0x9a   :  { %v1164_v47 = vsub.f32 %v1127_v26, %v71_v43  ;;  %794 = vpow2.f32 %v82_v41  ;;  %v1168_v49 = vsub.f32 %v1132_v27, %v71_v43  ;;  %v1212_v41 = vsel %vm458_vm2, %v1198_v28, 0.0 }
  0x9b   :  { %v84_v46 = vmul.f32 1.442695, %v1154_v40  ;;  %v86_v48 = vmul.f32 1.442695, %v1158_v42  ;;  %796 = vpow2.f32 %v88_v44  ;;  %v194_v44 = vsel %vm185_vm3, %v1108_v21, -inf }
  0x9c   :  { %798 = vpow2.f32 %v90_v45  ;;  %v92_v50 = vmul.f32 1.442695, %v1164_v47  ;;  %v94_v51 = vmul.f32 1.442695, %v1168_v49  ;;  %v190_v45 = vsel %vm185_vm3, %v1122_v25, -inf }
  0x9d   :  { %800 = vpow2.f32 %v84_v46 }
  0x9e   :  { %802 = vpow2.f32 %v86_v48 }
  0x9f   :  { %804 = vpow2.f32 %v92_v50  ;;  %v1223_v50 = vsel %vm458_vm2, %v1208_v39, 0.0 }
  0xa0   :  { %806 = vpow2.f32 %v94_v51  ;;  %v645_v51 = vadd.f32 %v1212_v41, %v1202_v31 }
  0xa6   :  { %v793_v55 = vpop.eup %792 }
  0xa7   :  { %v795_v57 = vpop.eup %794 }
  0xa8   :  { %v797_v60 = vpop.eup %796  ;;  %v96_v6 = vadd.f32 %v795_v57, %v793_v55  ;;  %v195_v55 = vmax.f32 %v1103_v20, %v194_v44  ;;  %v1232_v57 = vsel %vm458_vm2, %v354_v16, 0.0 }
  0xa9   :  { %v799_v62 = vpop.eup %798 }
  0xaa   :  { %v801_v1 = vpop.eup %800  ;;  %v102_v14 = vadd.f32 %v799_v62, %v797_v60 }
  0xab   :  { %v803_v7 = vpop.eup %802 }
  0xac   :  { %v805_v12 = vpop.eup %804  ;;  %v99_v15 = vadd.f32 %v803_v7, %v801_v1 }
  0xad   :  { %v807_v18 = vpop.eup %806 }
  0xae   :  { %v105_v36 = vadd.f32 %v807_v18, %v805_v12 }
  0xcf   :  { %v1172_v52 = vpop.f32.mrf.mxu0 }
  0xd0   :  { %v1174_v53 = vpop.f32.mrf.mxu1  ;;  %v483_v54 = vsel %vm458_vm2, %v1172_v52, -inf }
  0xd1   :  { %v775_v56 = vpop.f32.mrf.mxu0  ;;  %484 = vmax.xlane.f32.xlu0 %v483_v54  ;;  %v489_v59 = vsel %vm458_vm2, %v1174_v53, -inf }
  0xd2   :  { %v781_v58 = vpop.f32.mrf.mxu1  ;;  %v191_v56 = vmax.f32 %v1117_v24, %v190_v45  ;;  %v652_v24 = vadd.f32 %v1232_v57, %v1223_v50 }
  0xd3   :  { %v1180_v61 = vpop.f32.mrf.mxu0 }
  0xd4   :  { %v1182_v63 = vpop.f32.mrf.mxu1  ;;  %v486_v0 = vsel %vm458_vm2, %v1180_v61, -inf  ;;  %v451_v12 = vsub.f32 0.0, %v1180_v61 }
  0xd5   :  { %v776_v2 = vpop.f32.mrf.mxu0  ;;  %v595_v3 = vmax.f32 %v483_v54, %v486_v0  ;;  %487 = vmax.xlane.f32.xlu1 %v486_v0  ;;  %490 = vmax.xlane.f32.xlu0 %v489_v59  ;;  %v492_v5 = vsel %vm458_vm2, %v1182_v63, -inf }
  0xd6   :  { %v782_v8 = vpop.f32.mrf.mxu1  ;;  %v602_v9 = vmax.f32 %v489_v59, %v492_v5  ;;  %v198_v59 = vsel %vm185_vm3, %v1132_v27, -inf }
  0xd7   :  { %v596_v10 = vrot.slane %v595_v3, 4 }
  0xd8   :  { %v603_v11 = vrot.slane %v602_v9, 4 }
  0xd9   :  { %v597_v13 = vmax.f32 %v595_v3, %v596_v10  ;;  %493 = vmax.xlane.f32.xlu1 %v492_v5  ;;  %97 = vadd.xlane.f32.xlu0 %v96_v6  ;;  %v199_v3 = vmax.f32 %v1127_v26, %v198_v59  ;;  %v646_v5 = vrot.slane %v645_v51, 4  ;;  %v452_v26 = vsub.f32 0.0, %v1174_v53 }
  0xda   :  { %v604_v22 = vmax.f32 %v602_v9, %v603_v11  ;;  %v653_v9 = vrot.slane %v652_v24, 4 }
  0xdb   :  { %v598_v29 = vrot.slane %v597_v13, 2  ;;  %v647_v8 = vadd.f32 %v646_v5, %v645_v51 }
  0xdc   :  { %v605_v30 = vrot.slane %v604_v22, 2  ;;  %v654_v11 = vadd.f32 %v653_v9, %v652_v24 }
  0xdd   :  { %v599_v32 = vmax.f32 %v597_v13, %v598_v29  ;;  %103 = vadd.xlane.f32.xlu0 %v102_v14  ;;  %100 = vadd.xlane.f32.xlu1 %v99_v15  ;;  %v648_v10 = vrot.slane %v647_v8, 2  ;;  %v450_v13 = vsub.f32 0.0, %v1172_v52  ;;  %v453_v14 = vsub.f32 0.0, %v1182_v63 }
  0xde   :  { %v606_v43 = vmax.f32 %v604_v22, %v605_v30  ;;  %v655_v18 = vrot.slane %v654_v11, 2  ;;  %v455_v22 = vmul.f32 %v451_v12, %v1198_v28 }
  0xdf   :  { %v600_v46 = vrot.slane %v599_v32, 1  ;;  %v649_v15 = vadd.f32 %v648_v10, %v647_v8  ;;  %v454_v30 = vmul.f32 %v450_v13, %v1191_v17 }
  0xe0   :  { %v607_v48 = vrot.slane %v606_v43, 1  ;;  %v656_v44 = vadd.f32 %v655_v18, %v654_v11  ;;  %v1261_v51 = vsel %vm458_vm2, %v455_v22, 0.0 }
  0xe1   :  { %v1227_v54 = vmax.f32 %v599_v32, %v600_v46  ;;  %188 = vmax.xlane.f32.xlu0 %v187_v33  ;;  %106 = vadd.xlane.f32.xlu1 %v105_v36  ;;  %v457_v32 = vmul.f32 %v453_v14, %v354_v16  ;;  %v456_v33 = vmul.f32 %v452_v26, %v1208_v39  ;;  %v1277_v24 = vsel %vm458_vm2, %v454_v30, 0.0 }
  0xe2   :  { %v1234_v58 = vmax.f32 %v606_v43, %v607_v48  ;;  %v650_v43 = vrot.slane %v649_v15, 1  ;;  %v241_v48 = vrot.slane %v214_v23, 1 }
  0xe3   :  { %v609_v60 = vsub.f32 %v1172_v52, %v1227_v54  ;;  %v610_v62 = vsub.f32 %v1180_v61, %v1227_v54 }
  0xe4   :  { %v611_v0 = vsub.f32 %v1174_v53, %v1234_v58  ;;  %v612_v20 = vsub.f32 %v1182_v63, %v1234_v58  ;;  %v651_v11 = vadd.f32 %v650_v43, %v649_v15 }
  0xe5   :  { %v613_v1 = vmul.f32 1.442695, %v609_v60  ;;  %v615_v2 = vmul.f32 1.442695, %v610_v62  ;;  %196 = vmax.xlane.f32.xlu0 %v195_v55  ;;  %192 = vmax.xlane.f32.xlu1 %v191_v56  ;;  %v1265_v55 = vsel %vm458_vm2, %v1198_v28, -inf  ;;  %v1270_v60 = vsel %vm458_vm2, %v1191_v17, -inf }
  0xe6   :  { %v617_v6 = vmul.f32 1.442695, %v611_v0  ;;  %v619_v7 = vmul.f32 1.442695, %v612_v20  ;;  %v1273_v62 = vsel %vm458_vm2, %v354_v16, -inf  ;;  %v1283_v28 = vsel %vm458_vm2, %v456_v33, 0.0 }
  0xe7   :  { %808 = vpow2.f32 %v613_v1  ;;  %v1280_v1 = vsel %vm458_vm2, %v457_v32, 0.0  ;;  %v581_v17 = vadd.f32 %v1261_v51, %v1277_v24  ;;  %v1290_v16 = vsel %vm458_vm2, %v1208_v39, -inf }
  0xe8   :  { %810 = vpow2.f32 %v615_v2  ;;  %v588_v8 = vadd.f32 %v1280_v1, %v1283_v28  ;;  %v574_v12 = vmax.f32 %v1290_v16, %v1273_v62  ;;  %v659_v32 = vadd.f32 1e-06, %v651_v11 }
  0xe9   :  { %812 = vpow2.f32 %v617_v6  ;;  %200 = vmax.xlane.f32.xlu1 %v199_v3  ;;  %v657_v6 = vrot.slane %v656_v44, 1  ;;  %v582_v39 = vrot.slane %v581_v17, 4 }
  0xea   :  { %814 = vpow2.f32 %v619_v7  ;;  %v567_v7 = vmax.f32 %v1270_v60, %v1265_v55  ;;  %v589_v22 = vrot.slane %v588_v8, 4  ;;  %v575_v33 = vrot.slane %v574_v12, 4 }
  0xeb   :  { %v658_v26 = vadd.f32 %v657_v6, %v656_v44  ;;  %816 = vrcp.f32 %v659_v32 }
  0xec   :  { %v568_v18 = vrot.slane %v567_v7, 4 }
  0xf4   :  { %v809_v29 = vpop.eup %808 }
  0xf5   :  { %v811_v36 = vpop.eup %810  ;;  %v621_v45 = vsel %vm458_vm2, %v809_v29, 0.0 }
  0xf6   :  { %v813_v46 = vpop.eup %812  ;;  %v622_v56 = vsel %vm458_vm2, %v811_v36, 0.0 }
  0xf7   :  { %v815_v59 = vpop.eup %814  ;;  %v623_v0 = vadd.f32 %v622_v56, %v621_v45  ;;  %v630_v20 = vsel %vm458_vm2, %v813_v46, 0.0  ;;  %v660_v46 = vadd.f32 1e-06, %v658_v26  ;;  %v590_v56 = vadd.f32 %v589_v22, %v588_v8 }
  0xf8   :  { %v631_v2 = vsel %vm458_vm2, %v815_v59, 0.0  ;;  %v576_v59 = vmax.f32 %v574_v12, %v575_v33 }
  0xf9   :  { %v624_v3 = vrot.slane %v623_v0, 4  ;;  %v632_v5 = vadd.f32 %v631_v2, %v630_v20  ;;  %v591_v2 = vrot.slane %v590_v56, 2 }
  0xfa   :  { %242 = vrot.lane.b32.xlu1 %v241_v48, %s970_s3  ;;  %v569_v48 = vmax.f32 %v567_v7, %v568_v18 }
  0xfb   :  { %226 = vrot.lane.b32.xlu0 %v214_v23, %s970_s3  ;;  %v625_v9 = vadd.f32 %v624_v3, %v623_v0  ;;  %v633_v10 = vrot.slane %v632_v5, 4  ;;  %v583_v23 = vadd.f32 %v582_v39, %v581_v17  ;;  %v577_v3 = vrot.slane %v576_v59, 2  ;;  %v817_v39 = vpop.eup %816 }
  0xfc   :  { %v570_v44 = vrot.slane %v569_v48, 2  ;;  %v592_v17 = vadd.f32 %v591_v2, %v590_v56 }
  0xfd   :  { %v626_v13 = vrot.slane %v625_v9, 2  ;;  %v634_v14 = vadd.f32 %v633_v10, %v632_v5  ;;  %v584_v0 = vrot.slane %v583_v23, 2 }
  0xfe   :  { %v571_v6 = vmax.f32 %v569_v48, %v570_v44  ;;  %v593_v7 = vrot.slane %v592_v17, 1 }
  0xff   :  { %v627_v29 = vadd.f32 %v626_v13, %v625_v9  ;;  %v635_v30 = vrot.slane %v634_v14, 2  ;;  %v585_v5 = vadd.f32 %v584_v0, %v583_v23  ;;  %v578_v9 = vmax.f32 %v576_v59, %v577_v3 }
 0x100   :  { %v572_v11 = vrot.slane %v571_v6, 1  ;;  %v594_v18 = vadd.f32 %v593_v7, %v592_v17 }
 0x101   :  { %v628_v36 = vrot.slane %v627_v29, 1  ;;  %v636_v45 = vadd.f32 %v635_v30, %v634_v14  ;;  %v586_v10 = vrot.slane %v585_v5, 1  ;;  %v579_v8 = vrot.slane %v578_v9, 1 }
 0x102   :  { %v573_v12 = vmax.f32 %v571_v6, %v572_v11 }
 0x103   :  { %v629_v15 = vadd.f32 %v628_v36, %v627_v29  ;;  %v637_v43 = vrot.slane %v636_v45, 1  ;;  %v587_v13 = vadd.f32 %v586_v10, %v585_v5  ;;  %v580_v30 = vmax.f32 %v578_v9, %v579_v8 }
 0x104   :  { %vm661_vm4 = vcmp.gt.f32.partialorder %v573_v12, 0.0 }
 0x105   :  { %v638_v20 = vadd.f32 %v637_v43, %v636_v45  ;;  %818 = vlog2.f32 %v629_v15  ;;  %v665_v23 = vmul.f32 %v817_v39, %v587_v13  ;;  %vm662_vm5 = vcmp.gt.f32.partialorder %v580_v30, 0.0 }
 0x106   :  { %820 = vrcp.f32 %v660_v46 }
 0x107   :  { %822 = vlog2.f32 %v638_v20 }
 0x112   :  { %v819_v14 = vpop.eup %818 }
 0x113   :  { %v821_v26 = vpop.eup %820  ;;  %v640_v22 = vmul.f32 0.6931472, %v819_v14 }
 0x114   :  { %v823_v29 = vpop.eup %822  ;;  %v666_v45 = vmul.f32 %v821_v26, %v594_v18 }
 0x115   :  { %v642_v32 = vmul.f32 0.6931472, %v823_v29  ;;  %v643_v33 = vadd.f32 %v640_v22, %v1227_v54  ;;  %v1318_v54 = vld [vmem:[%s1462_s5] sm:$0xf] }
 0x117   :  { %v644_v36 = vadd.f32 %v642_v32, %v1234_v58  ;;  %v667_v46 = vadd.f32 %v665_v23, %v643_v33 }
 0x119   :  { %v668_v48 = vadd.f32 %v666_v45, %v644_v36  ;;  %v669_v56 = vsel %vm661_vm4, %v667_v46, 0.0 }
 0x11a   :  { %532 = vadd.xlane.f32.xlu0 %v1202_v31  ;;  %v682_v15 = vsel %vm458_vm2, %v669_v56, 0.0  ;;  %v1313_v31 = vld [vmem:[%s1461_s4] sm:$0xf] }
 0x11b   :  { %v670_v43 = vsel %vm662_vm5, %v668_v48, 0.0 }
 0x11c   :  { %v683_v59 = vsel %vm458_vm2, %v670_v43, 0.0 }
 0x11d   :  { %v1303_v0 = vadd.f32 %v683_v59, %v682_v15 }
 0x11e   :  { %538 = vadd.xlane.f32.xlu0 %v1223_v50  ;;  %535 = vadd.xlane.f32.xlu1 %v1212_v41  ;;  %v279_v50 = vmul.f32 0.5, %v1313_v31  ;;  %v285_v41 = vmul.f32 0.5, %v1318_v54 }
 0x120   :  { %v281_v58 = vrot.slane %v279_v50, 2 }
 0x122   :  { %472 = vadd.xlane.f32.xlu0 %v1277_v24  ;;  %541 = vadd.xlane.f32.xlu1 %v1232_v57  ;;  %v287_v24 = vrot.slane %v285_v41, 2  ;;  %v283_v57 = vsub.f32 %v1313_v31, %v281_v58 }
 0x124   :  { %v289_v20 = vsub.f32 %v1318_v54, %v287_v24  ;;  %v290_v44 = vadd.f32 %v287_v24, %v1318_v54 }
 0x126   :  { %475 = vadd.xlane.f32.xlu1 %v1261_v51  ;;  %v284_v51 = vadd.f32 %v281_v58, %v1313_v31  ;;  %v302_v3 = vmax.f32 %v283_v57, %v289_v20  ;;  %v296_v6 = vsub.f32 %v290_v44, %v289_v20  ;;  %v315_v13 = vmin.f32 %v283_v57, %v289_v20 }
 0x128   :  { %v301_v2 = vmin.f32 %v284_v51, %v290_v44  ;;  %v291_v5 = vsub.f32 %v284_v51, %v283_v57  ;;  %v298_v11 = vrot.slane %v296_v6, 1  ;;  %v314_v39 = vmax.f32 %v284_v51, %v290_v44 }
 0x12a   :  { %v303_v17 = vsub.f32 %v301_v2, %v302_v3  ;;  %v293_v10 = vrot.slane %v291_v5, 1  ;;  %v300_v22 = vmul.f32 %v298_v11, %v296_v6  ;;  %v316_v33 = vsub.f32 %v314_v39, %v315_v13 }
 0x12c   :  { %v304_v8 = vmax.f32 %v303_v17, 0.0  ;;  %v295_v18 = vmul.f32 %v293_v10, %v291_v5  ;;  %v318_v15 = vrot.slane %v316_v33, 1 }
 0x12e   :  { %v306_v32 = vrot.slane %v304_v8, 1  ;;  %v309_v56 = vadd.f32 %v300_v22, %v295_v18  ;;  %v1347_v50 = vmul.f32 %v318_v15, %v316_v33 }
 0x130   :  { %v1342_v48 = vmul.f32 %v306_v32, %v304_v8  ;;  %v322_v57 = vadd.f32 1e-06, %v1347_v50 }
 0x132   :  { %v1345_v59 = vsub.f32 %v309_v56, %v1342_v48 }
 0x15a   :  { %v1326_v9 = vpop.xlane.xlu0 %484 }
 0x15b   :  { %v495_v7 = vsub.f32 %v1172_v52, %v1326_v9 }
 0x15d   :  { %v499_v14 = vmul.f32 1.442695, %v495_v7 }
 0x15e   :  { %v1330_v12 = vpop.xlane.xlu1 %487  ;;  %v1332_v26 = vpop.xlane.xlu0 %490 }
 0x15f   :  { %824 = vpow2.f32 %v499_v14  ;;  %v496_v29 = vsub.f32 %v1180_v61, %v1330_v12  ;;  %v497_v30 = vsub.f32 %v1174_v53, %v1332_v26 }
 0x161   :  { %v503_v52 = vmul.f32 1.442695, %v497_v30  ;;  %v501_v23 = vmul.f32 1.442695, %v496_v29 }
 0x162   :  { %v1338_v36 = vpop.xlane.xlu1 %493  ;;  %v98_v45 = vpop.xlane.xlu0 %97 }
 0x163   :  { %v498_v46 = vsub.f32 %v1182_v63, %v1338_v36  ;;  %826 = vpow2.f32 %v503_v52  ;;  %v311_v63 = vadd.f32 1e-06, %v1345_v59 }
 0x164   :  { %828 = vlog2.f32 %v98_v45 }
 0x165   :  { %v505_v43 = vmul.f32 1.442695, %v498_v46  ;;  %830 = vpow2.f32 %v501_v23  ;;  %v260_v23 = vlaneseq }
 0x166   :  { %v101_v61 = vpop.xlane.xlu1 %100  ;;  %v104_v53 = vpop.xlane.xlu0 %103 }
 0x167   :  { %832 = vpow2.f32 %v505_v43 }
 0x168   :  { %834 = vlog2.f32 %v101_v61 }
 0x16a   :  { %v107_v41 = vpop.xlane.xlu1 %106  ;;  %v189_v58 = vpop.xlane.xlu0 %188 }
 0x16b   :  { %vm202_vm6 = vcmp.ge.f32.partialorder %v189_v58, %v1098_v19  ;;  %836 = vlog2.f32 %v107_v41 }
 0x16c   :  { %v825_v24 = vpop.eup %824  ;;  %838 = vlog2.f32 %v104_v53  ;;  %v761_v20 = vsel %vm202_vm6, 1.0, %v968_v4 }
 0x16d   :  { %v507_v51 = vsel %vm458_vm2, %v825_v24, 0.0  ;;  %840 = vrcp.f32 %v311_v63  ;;  %v216_v3 = vsel %vm215_vm7, %v761_v20, 0.0  ;;  %v261_v24 = vshrl.u32 %v260_v23, 7 }
 0x16e   :  { %508 = vadd.xlane.f32.xlu1 %v507_v51  ;;  %v193_v44 = vpop.xlane.xlu1 %192  ;;  %v197_v2 = vpop.xlane.xlu0 %196  ;;  %842 = vrcp.f32 %v322_v57 }
 0x16f   :  { %vm203_vm8 = vcmp.ge.f32.partialorder %v193_v44, %v1122_v25  ;;  %vm204_vm9 = vcmp.ge.f32.partialorder %v197_v2, %v1108_v21 }
 0x170   :  { %v762_v19 = vsel %vm203_vm8, 1.0, %v968_v4  ;;  %v763_v5 = vsel %vm204_vm9, 1.0, %v968_v4  ;;  %v827_v6 = vpop.eup %826 }
 0x171   :  { %v217_v17 = vsel %vm215_vm7, %v762_v19, 0.0  ;;  %v829_v10 = vpop.eup %828  ;;  %v513_v11 = vsel %vm458_vm2, %v827_v6, 0.0  ;;  %v232_v39 = vsel %vm215_vm7, %v763_v5, 0.0  ;;  %v257_v5 = vsub.f32 %v1313_v31, %v1318_v54 }
 0x172   :  { %481 = vadd.xlane.f32.xlu1 %v1280_v1  ;;  %v201_v7 = vpop.xlane.xlu1 %200  ;;  %v831_v25 = vpop.eup %830  ;;  %v109_v8 = vmul.f32 0.6931472, %v829_v10  ;;  %514 = vadd.xlane.f32.xlu0 %v513_v11  ;;  %v218_v21 = vadd.f32 %v217_v17, %v216_v3  ;;  %v262_v6 = vsub.s32 0, %v261_v24 }
 0x173   :  { %vm205_vm10 = vcmp.ge.f32.partialorder %v201_v7, %v1132_v27  ;;  %v510_v33 = vsel %vm458_vm2, %v831_v25, 0.0  ;;  %v124_v27 = vld [vmem:[%s1458_s1] sm:$0xff] }
 0x174   :  { %v833_v13 = vpop.eup %832  ;;  %v764_v14 = vsel %vm205_vm10, 1.0, %v968_v4  ;;  %v116_v29 = vsub.f32 %v1141_v34, %v109_v8  ;;  %v117_v1 = vsub.f32 %v1144_v35, %v109_v8  ;;  %v125_v4 = vld [vmem:[%s1458_s1 + $0x8] sm:$0xff]  ;;  %v126_v34 = vld [vmem:[%s1458_s1 + $0x10] sm:$0xff]  ;;  %v127_v35 = vld [vmem:[%s1458_s1 + $0x18] sm:$0xff]  ;;  %v219_v45 = vrot.slane %v218_v21, 4 }
 0x175   :  { %v835_v18 = vpop.eup %834  ;;  %v516_v22 = vsel %vm458_vm2, %v833_v13, 0.0  ;;  %v233_v30 = vsel %vm215_vm7, %v764_v14, 0.0  ;;  %v258_v8 = vand.u32 2147483647, %v257_v5 }
 0x176   :  { %v111_v32 = vmul.f32 0.6931472, %v835_v18  ;;  %517 = vadd.xlane.f32.xlu1 %v516_v22  ;;  %v234_v52 = vadd.f32 %v233_v30, %v232_v39  ;;  %511 = vadd.xlane.f32.xlu0 %v510_v33  ;;  %v132_v61 = vmul.f32 %v124_v27, %v116_v29  ;;  %v133_v53 = vmul.f32 %v125_v4, %v117_v1 }
 0x177   :  { %v220_v57 = vadd.f32 %v219_v45, %v218_v21 }
 0x178   :  { %v118_v46 = vsub.f32 %v1154_v40, %v111_v32  ;;  %v119_v56 = vsub.f32 %v1158_v42, %v111_v32  ;;  %v235_v15 = vrot.slane %v234_v52, 4  ;;  %v837_v43 = vpop.eup %836  ;;  %v321_v40 = vsub.f32 %v1347_v50, %v1345_v59  ;;  %v130_v59 = vld [vmem:[%s1458_s1 + $0x30] sm:$0xff]  ;;  %v131_v50 = vld [vmem:[%s1458_s1 + $0x38] sm:$0xff] }
 0x179   :  { %v839_v41 = vpop.eup %838  ;;  %v115_v44 = vmul.f32 0.6931472, %v837_v43  ;;  %v140_v3 = vadd.f32 %v133_v53, %v132_v61  ;;  %v221_v17 = vrot.slane %v220_v57, 2 }
 0x17a   :  { %v134_v58 = vmul.f32 %v126_v34, %v118_v46  ;;  %v135_v63 = vmul.f32 %v127_v35, %v119_v56  ;;  %478 = vadd.xlane.f32.xlu0 %v1283_v28  ;;  %v236_v51 = vadd.f32 %v235_v15, %v234_v52  ;;  %v841_v20 = vpop.eup %840  ;;  %v113_v42 = vmul.f32 0.6931472, %v839_v41  ;;  %v243_v34 = vpop.permute.xlu1 %242 }
 0x17b   :  { %v843_v19 = vpop.eup %842  ;;  %v122_v10 = vsub.f32 %v1164_v47, %v115_v44  ;;  %v123_v11 = vsub.f32 %v1168_v49, %v115_v44  ;;  %v313_v7 = vmul.f32 %v841_v20, %v1342_v48  ;;  %v256_v47 = vld [vmem:[%s1463_s6] sm:$0x1]  ;;  %v129_v48 = vld [vmem:[%s1458_s1 + $0x28] sm:$0xff] }
 0x17c   :  { %v143_v2 = vadd.f32 %v135_v63, %v134_v58  ;;  %v237_v28 = vrot.slane %v236_v51, 2  ;;  %v324_v25 = vmul.f32 %v843_v19, %v321_v40  ;;  %v120_v31 = vsub.f32 %v1147_v37, %v113_v42  ;;  %v128_v49 = vld [vmem:[%s1458_s1 + $0x20] sm:$0xff]  ;;  %s971_s1 = smov 1  }
 0x17d   :  { %v121_v54 = vsub.f32 %v1150_v38, %v113_v42  ;;  %v222_v37 = vadd.f32 %v221_v17, %v220_v57  ;;  %v138_v38 = vmul.f32 %v130_v59, %v122_v10  ;;  %v139_v39 = vmul.f32 %v131_v50, %v123_v11 }
 0x17e   :  { %144 = vadd.xlane.f32.xlu1 %v143_v2  ;;  %141 = vadd.xlane.f32.xlu0 %v140_v3  ;;  %v238_v21 = vadd.f32 %v237_v28, %v236_v51  ;;  %v263_v13 = vrot.slane %v256_v47, %v262_v6  ;;  %v325_v14 = vsub.f32 %v313_v7, %v324_v25 }
 0x17f   :  { %v136_v18 = vmul.f32 %v128_v49, %v120_v31  ;;  %v137_v22 = vmul.f32 %v129_v48, %v121_v54  ;;  %v149_v1 = vadd.f32 %v139_v39, %v138_v38  ;;  %v49_v48 = vld [vmem:[#allocation2] sm:$0x1]  ;;  %v157_v38 = vld [vmem:[%s1459_s2 + $0x8] sm:$0xff] }
 0x180   :  { %v239_v29 = vrot.slane %v238_v21, 1  ;;  %v265_v30 = vmul.f32 %v263_v13, %v258_v8  ;;  %v326_v32 = vsub.f32 1.0, %v325_v14 }
 0x181   :  { %v146_v33 = vadd.f32 %v137_v22, %v136_v18  ;;  %v156_v22 = vld [vmem:[%s1459_s2] sm:$0xff] }
 0x182   :  { %463 = vmax.xlane.f32.xlu1 %v1265_v55  ;;  %460 = vmax.xlane.f32.xlu0 %v1270_v60  ;;  %v223_v55 = vrot.slane %v222_v37, 1  ;;  %v240_v27 = vadd.f32 %v239_v29, %v238_v21  ;;  %v267_v4 = vsel %vm266_vm11, %v265_v30, 0.0  ;;  %v327_v52 = vmul.f32 %v326_v32, %v256_v47 }
 0x184   :  { %v224_v60 = vadd.f32 %v223_v55, %v222_v37  ;;  %v245_v23 = vsub.f32 %v240_v27, %v243_v34  ;;  %v329_v45 = vsel %vm328_vm12, %v327_v52, 0.0 }
 0x186   :  { %469 = vmax.xlane.f32.xlu1 %v1273_v62  ;;  %466 = vmax.xlane.f32.xlu0 %v1290_v16  ;;  %v685_v62 = vsel %vm458_vm2, %v1303_v0, 0.0  ;;  %v227_v16 = vpop.permute.xlu0 %226  ;;  %v246_v56 = vand.u32 2147483647, %v245_v23  ;;  %vm183_vm2 = vcmask 0  }
 0x187   :  { %v229_v35 = vsub.f32 %v224_v60, %v227_v16  ;;  %v159_v16 = vld [vmem:[%s1459_s2 + $0x18] sm:$0xff] }
 0x189   :  { %v230_v46 = vand.u32 2147483647, %v229_v35 }
 0x18a   :  { %150 = vadd.xlane.f32.xlu1 %v149_v1  ;;  %147 = vadd.xlane.f32.xlu0 %v146_v33 }
 0x18b   :  { %v247_v15 = vadd.f32 %v246_v56, %v230_v46 }
 0x18d   :  { %v248_v43 = vmul.f32 0.5, %v247_v15 }
 0x18e   :  { %686 = vadd.xlane.f32.xlu1 %v685_v62  ;;  %268 = vadd.xlane.f32.xlu0 %v267_v4 }
 0x192   :  { %330 = vadd.xlane.f32.xlu0 %v329_v45 }
 0x19f   :  { %250 = vrot.lane.b32.xlu1 %v248_v43, %s971_s1 }
 0x1a3   :  { %v533_v53 = vpop.xlane.xlu0 %532 }
 0x1a4   :  { %v543_v0 = vadd.f32 1e-06, %v533_v53 }
 0x1a7   :  { %v536_v61 = vpop.xlane.xlu1 %535  ;;  %v539_v58 = vpop.xlane.xlu0 %538 }
 0x1a8   :  { %v545_v57 = vadd.f32 1e-06, %v539_v58  ;;  %v544_v20 = vadd.f32 1e-06, %v536_v61 }
 0x1ab   :  { %v542_v41 = vpop.xlane.xlu1 %541  ;;  %v473_v51 = vpop.xlane.xlu0 %472 }
 0x1ac   :  { %v546_v44 = vadd.f32 1e-06, %v542_v41 }
 0x1af   :  { %v476_v63 = vpop.xlane.xlu1 %475 }
 0x1f7   :  { %v509_v24 = vpop.xlane.xlu1 %508 }
 0x1f8   :  { %844 = vlog2.f32 %v509_v24 }
 0x1f9   :  { %846 = vrcp.f32 %v543_v0 }
 0x1fa   :  { %848 = vrcp.f32 %v545_v57 }
 0x1fb   :  { %v482_v2 = vpop.xlane.xlu1 %481  ;;  %v515_v40 = vpop.xlane.xlu0 %514 }
 0x1fc   :  { %850 = vlog2.f32 %v515_v40 }
 0x1fd   :  { %852 = vrcp.f32 %v544_v20 }
 0x1fe   :  { %854 = vrcp.f32 %v546_v44 }
 0x1ff   :  { %v518_v19 = vpop.xlane.xlu1 %517  ;;  %v512_v42 = vpop.xlane.xlu0 %511 }
 0x200   :  { %856 = vlog2.f32 %v518_v19 }
 0x201   :  { %858 = vlog2.f32 %v512_v42 }
 0x202   :  { %860 = vrcp.f32 %v49_v48 }
 0x203   :  { %v479_v3 = vpop.xlane.xlu0 %478 }
 0x205   :  { %v845_v5 = vpop.eup %844 }
 0x206   :  { %v847_v17 = vpop.eup %846  ;;  %v520_v28 = vmul.f32 0.6931472, %v845_v5 }
 0x207   :  { %v145_v6 = vpop.xlane.xlu1 %144  ;;  %v142_v10 = vpop.xlane.xlu0 %141  ;;  %v555_v14 = vmul.f32 %v847_v17, %v473_v51 }
 0x208   :  { %v849_v11 = vpop.eup %848  ;;  %v153_v54 = vsub.f32 0.0, %v145_v6  ;;  %v527_v47 = vadd.f32 %v520_v28, %v1326_v9  ;;  %v152_v39 = vsub.f32 0.0, %v142_v10 }
 0x209   :  { %v851_v7 = vpop.eup %850  ;;  %v557_v21 = vmul.f32 %v849_v11, %v479_v3 }
 0x20a   :  { %v853_v25 = vpop.eup %852  ;;  %v524_v59 = vmul.f32 0.6931472, %v851_v7  ;;  %v161_v30 = vmul.f32 %v157_v38, %v153_v54  ;;  %v559_v32 = vadd.f32 %v555_v14, %v527_v47  ;;  %v160_v27 = vmul.f32 %v156_v22, %v152_v39 }
 0x20b   :  { %v464_v50 = vpop.xlane.xlu1 %463  ;;  %v855_v31 = vpop.eup %854  ;;  %v556_v9 = vmul.f32 %v853_v25, %v476_v63 }
 0x20c   :  { %v461_v49 = vpop.xlane.xlu0 %460  ;;  %v529_v37 = vadd.f32 %v524_v59, %v1332_v26  ;;  %v558_v26 = vmul.f32 %v855_v31, %v482_v2  ;;  %v170_v23 = vsel %vm168_vm13, %v161_v30, 0.0  ;;  %vm548_vm1 = vcmp.gt.f32.partialorder %v464_v50, 0.0 }
 0x20d   :  { %v857_v8 = vpop.eup %856  ;;  %vm547_vm0 = vcmp.gt.f32.partialorder %v461_v49, 0.0  ;;  %v169_v56 = vsel %vm168_vm13, %v160_v27, 0.0 }
 0x20e   :  { %v859_v13 = vpop.eup %858  ;;  %v526_v18 = vmul.f32 0.6931472, %v857_v8  ;;  %v561_v29 = vadd.f32 %v557_v21, %v529_v37  ;;  %v563_v43 = vsel %vm547_vm0, %v559_v32, 0.0  ;;  %v171_v24 = vadd.f32 %v170_v23, %v169_v56 }
 0x20f   :  { %v522_v55 = vmul.f32 0.6931472, %v859_v13  ;;  %v470_v1 = vpop.xlane.xlu1 %469  ;;  %v861_v5 = vpop.eup %860 }
 0x210   :  { %v530_v33 = vadd.f32 %v526_v18, %v1338_v36  ;;  %v467_v60 = vpop.xlane.xlu0 %466  ;;  %vm550_vm14 = vcmp.gt.f32.partialorder %v470_v1, 0.0 }
 0x211   :  { %v528_v4 = vadd.f32 %v522_v55, %v1330_v12  ;;  %vm549_vm15 = vcmp.gt.f32.partialorder %v467_v60, 0.0  ;;  %v158_v12 = vld [vmem:[%s1459_s2 + $0x10] sm:$0xff]  ;;  %s973_s2 = smov [#allocation8]  }
 0x212   :  { %v562_v52 = vadd.f32 %v558_v26, %v530_v33  ;;  %v565_v62 = vsel %vm549_vm15, %v561_v29, 0.0  ;;  %s729_s29 = sshll.u32 %s973_s2, 4  ;;  %s730_s29 = int_to_ptr.vmem [resolvable:$true] %s729_s29 }
 0x213   :  { %v560_v34 = vadd.f32 %v556_v9, %v528_v4  ;;  %v151_v35 = vpop.xlane.xlu1 %150  ;;  %v671_v41 = vadd.f32 %v565_v62, %v563_v43 }
 0x214   :  { %v566_v45 = vsel %vm550_vm14, %v562_v52, 0.0  ;;  %v155_v36 = vsub.f32 0.0, %v151_v35  ;;  %v148_v46 = vpop.xlane.xlu0 %147 }
 0x215   :  { %v564_v15 = vsel %vm548_vm1, %v560_v34, 0.0  ;;  %v154_v61 = vsub.f32 0.0, %v148_v46 }
 0x216   :  { %v672_v53 = vadd.f32 %v566_v45, %v564_v15  ;;  %v163_v58 = vmul.f32 %v159_v16, %v155_v36 }
 0x217   :  { %v162_v63 = vmul.f32 %v158_v12, %v154_v61  ;;  %v687_v0 = vpop.xlane.xlu1 %686 }
 0x218   :  { %v675_v57 = vadd.f32 %v672_v53, %v671_v41  ;;  %v269_v51 = vpop.xlane.xlu0 %268  ;;  %v174_v42 = vsel %vm168_vm13, %v163_v58, 0.0 }
 0x219   :  { %v172_v20 = vsel %vm168_vm13, %v162_v63, 0.0  ;;  %v270_v44 = vsel %vm266_vm11, %v269_v51, 0.0 }
 0x21a   :  { %v676_v2 = vrot.slane %v675_v57, 4  ;;  %v173_v40 = vadd.f32 %v172_v20, %v171_v24  ;;  %v271_v19 = vrot.slane %v270_v44, 4 }
 0x21b   :  { %v251_v3 = vpop.permute.xlu1 %250 }
 0x21c   :  { %v175_v6 = vadd.f32 %v174_v42, %v173_v40  ;;  %v677_v17 = vadd.f32 %v676_v2, %v675_v57  ;;  %v272_v28 = vadd.f32 %v271_v19, %v270_v44  ;;  %v331_v10 = vpop.xlane.xlu0 %330  ;;  %253 = vst.msk [vmem:[#allocation5] sm:$0x1] %vm183_vm2, %v251_v3 }
 0x21d   :  { %v333_v11 = vmul.f32 %v861_v5, %v331_v10 }
 0x21e   :  { %873 = shalt.err (!%p870_p4)
}
 0x21f   :  { %712 = dma.vmem_to_hbm [thread:$0]  %s710_s28, 16, %s1469_s12, [#allocation6]   ;;  %v176_v7 = vrot.slane %v175_v6, 4  ;;  %v678_v25 = vrot.slane %v677_v17, 2  ;;  %v273_v59 = vrot.slane %v272_v28, 2 }
 0x220   :  { %334 = vst.msk [vmem:[#allocation8] sm:$0x1] %vm183_vm2, %v333_v11  ;;  %s882_s8 = scalar_lea.vmem %s730_s29, 16  ;;  %s886_s18 = scalar_lea.vmem %s730_s29, 32 }
 0x221   :  { %v679_v50 = vadd.f32 %v678_v25, %v677_v17  ;;  %v274_v31 = vadd.f32 %v273_v59, %v272_v28  ;;  %p883_p5 = scmp.ne.s32.totalorder %s730_s29, %s882_s8  ;;  %p887_p6 = scmp.lt.s32.totalorder %s730_s29, %s730_s29 }
 0x222   :  { %p888_p7 = scmp.lt.s32.totalorder %s886_s18, %s882_s8 }
 0x224   :  { %p889_p8 = por %p888_p7, %p887_p6 }
 0x226   :  { %p890_p9 = pnand %p889_p8, %p883_p5 }
 0x228   :  { %893 = shalt.err (!%p890_p9)
}
 0x229   :  { %732 = dma.vmem_to_hbm [thread:$0]  %s730_s29, 16, %s1471_s14, [#allocation9]   ;;  %v177_v54 = vadd.f32 %v176_v7, %v175_v6  ;;  %v680_v47 = vrot.slane %v679_v50, 1  ;;  %v275_v49 = vrot.slane %v274_v31, 1 }
 0x22a   :  { %s974_s12 = smov [#allocation7]   ;;  %s975_s22 = smov [#allocation3]  }
 0x22b   :  { %v178_v48 = vrot.slane %v177_v54, 2  ;;  %s719_s21 = sshll.u32 %s974_s12, 4  ;;  %v681_v8 = vadd.f32 %v680_v47, %v679_v50  ;;  %v276_v37 = vadd.f32 %v275_v49, %v274_v31  ;;  %s699_s23 = sshll.u32 %s975_s22, 4  ;;  %s720_s21 = int_to_ptr.vmem [resolvable:$true] %s719_s21  ;;  %s700_s23 = int_to_ptr.vmem [resolvable:$true] %s699_s23 }
 0x22c   :  { %s976_s14 = smov [#allocation10]   ;;  %s902_s7 = scalar_lea.vmem %s720_s21, 16 }
 0x22d   :  { %v179_v21 = vadd.f32 %v178_v48, %v177_v54  ;;  %v689_v38 = vadd.f32 %v687_v0, %v681_v8  ;;  %v277_v13 = vmul.f32 %v861_v5, %v276_v37  ;;  %s739_s9 = sshll.u32 %s976_s14, 4  ;;  %p903_p10 = scmp.ne.s32.totalorder %s720_s21, %s902_s7  ;;  %s740_s9 = int_to_ptr.vmem [resolvable:$true] %s739_s9 }
 0x22e   :  { %s906_s1 = scalar_lea.vmem %s720_s21, 32  ;;  %p907_p11 = scmp.lt.s32.totalorder %s720_s21, %s720_s21 }
 0x22f   :  { %v180_v39 = vrot.slane %v179_v21, 1  ;;  %v690_v14 = vmul.f32 0.5, %v689_v38  ;;  %278 = vst.msk [vmem:[#allocation7] sm:$0x1] %vm183_vm2, %v277_v13  ;;  %p908_p12 = scmp.lt.s32.totalorder %s906_s1, %s902_s7 }
 0x231   :  { %v181_v18 = vadd.f32 %v180_v39, %v179_v21  ;;  %p909_p13 = por %p908_p12, %p907_p11 }
 0x233   :  { %p910_p0 = pnand %p909_p13, %p903_p10 }
 0x235   :  { %913 = shalt.err (!%p910_p0)
}
 0x236   :  { %722 = dma.vmem_to_hbm [thread:$0]  %s720_s21, 16, %s1470_s13, [#allocation6]   ;;  %v691_v22 = vmul.f32 %v861_v5, %v690_v14  ;;  %v182_v9 = vmul.f32 %v861_v5, %v181_v18 }
 0x237   :  { %s922_s24 = scalar_lea.vmem %s700_s23, 16  ;;  %s926_s25 = scalar_lea.vmem %s700_s23, 32 }
 0x238   :  { %692 = vst.msk [vmem:[#allocation10] sm:$0x1] %vm183_vm2, %v691_v22  ;;  %184 = vst.msk [vmem:[#allocation3] sm:$0x1] %vm183_vm2, %v182_v9  ;;  %p923_p1 = scmp.ne.s32.totalorder %s700_s23, %s922_s24  ;;  %p927_p2 = scmp.lt.s32.totalorder %s700_s23, %s700_s23 }
 0x239   :  { %p928_p3 = scmp.lt.s32.totalorder %s926_s25, %s922_s24 }
 0x23b   :  { %p929_p4 = por %p928_p3, %p927_p2 }
 0x23d   :  { %p930_p5 = pnand %p929_p4, %p923_p1 }
 0x23f   :  { %933 = shalt.err (!%p930_p5)
}
 0x240   :  { %702 = dma.vmem_to_hbm [thread:$0]  %s700_s23, 16, %s1468_s11, [#allocation4]  }
 0x241   :  { %s942_s13 = scalar_lea.vmem %s740_s9, 16  ;;  %s946_s4 = scalar_lea.vmem %s740_s9, 32 }
 0x242   :  { %p943_p6 = scmp.ne.s32.totalorder %s740_s9, %s942_s13  ;;  %p947_p7 = scmp.lt.s32.totalorder %s740_s9, %s740_s9 }
 0x243   :  { %p948_p8 = scmp.lt.s32.totalorder %s946_s4, %s942_s13 }
 0x245   :  { %p949_p9 = por %p948_p8, %p947_p7 }
 0x247   :  { %p950_p10 = pnand %p949_p9, %p943_p6 }
 0x249   :  { %953 = shalt.err (!%p950_p10)
}
 0x24a   :  { %742 = dma.vmem_to_hbm [thread:$0]  %s740_s9, 16, %s1472_s15, [#allocation9]  }
 0x24b   :  { %962 = dma.done.wait [#allocation4], 16  }
 0x24c   :  { %963 = vsyncadd [#allocation4], 4294967280 }
 0x24d   :  { %964 = dma.done.wait [#allocation6], 32  }
 0x24e   :  { %965 = vsyncadd [#allocation6], 4294967264 }
 0x24f   :  { %966 = dma.done.wait [#allocation9], 32  }
 0x250   :  { %967 = vsyncadd [#allocation9], 4294967264 }
 0x251   :  { %758 = vsyncpa [#allocation4], 1 }
 0x252   :  { %759 = vsyncpa [#allocation6], 1 }
 0x253   :  { %760 = vsyncpa [#allocation9], 1 }

</bundles_post_ra>
